<compile_context>
chip_gen: v7x
topology: tpu7x:2x2x1
jax: 0.10.0
libtpu: 0.0.40
codegen_flags: <defaults>
</compile_context>

<pallas_src>
import functools

import jax
import jax.numpy as jnp
from jax.experimental import pallas as pl
from jax.experimental.pallas import tpu as pltpu


def _nll_kernel(n_total, logp_ref, tgt_ref, out_ref, acc_ref):
    i = pl.program_id(0)

    @pl.when(i == 0)
    def _init():
        acc_ref[...] = jnp.zeros_like(acc_ref)

    logp = logp_ref[...]                       # (TILE_N, C), native dtype (f32/bf16)
    tgt = tgt_ref[...]                         # (TILE_N, 1), int32
    tile_n, c = logp.shape

    col = jax.lax.broadcasted_iota(jnp.int32, (tile_n, c), 1)
    row = jax.lax.broadcasted_iota(jnp.int32, (tile_n, c), 0) + i * tile_n
    mask = (col == tgt) & (row < n_total)      # one-hot per row, padded rows zeroed

    # Upcast only AFTER masking so the DMA carried the narrow dtype.
    picked = jnp.where(mask, logp, jnp.zeros_like(logp)).astype(jnp.float32)
    acc_ref[...] += jnp.sum(picked, keepdims=True)   # (1, 1) partial sum

    @pl.when(i == pl.num_programs(0) - 1)
    def _finalize():
        out_ref[...] = -acc_ref[...] / jnp.float32(n_total)


def kl_divergence_loss(predicted_prob, target, *, tile_n=None):
    """predicted_prob: (N, C) log-probs (any float dtype); target: (N,) int.

    Returns the scalar mean of -predicted_prob[i, target[i]].
    """
    n, c = predicted_prob.shape
    tgt2d = target.reshape(n, 1).astype(jnp.int32)

    if tile_n is None:
        # ~6 MiB per input buffer (x2 for double buffering) keeps us well inside
        # the scoped VMEM limit on every generation, including v7x (64 MiB phys).
        bytes_per_row = max(1, c * predicted_prob.dtype.itemsize)
        tile_n = min(1024, (6 * 1024 * 1024) // bytes_per_row)
        tile_n = max(8, (tile_n // 8) * 8)      # keep sublane dim a multiple of 8
    if tile_n >= n:
        tile_n = n                              # single full-array block is always legal

    grid = (pl.cdiv(n, tile_n),)

    out = pl.pallas_call(
        functools.partial(_nll_kernel, n),
        out_shape=jax.ShapeDtypeStruct((1, 1), jnp.float32),
        grid=grid,
        in_specs=[
            pl.BlockSpec((tile_n, c), lambda i: (i, 0)),
            pl.BlockSpec((tile_n, 1), lambda i: (i, 0)),
        ],
        out_specs=pl.BlockSpec((1, 1), lambda i: (0, 0)),
        scratch_shapes=[pltpu.VMEM((1, 1), jnp.float32)],
        compiler_params=pltpu.CompilerParams(
            dimension_semantics=("arbitrary",),
            vmem_limit_bytes=32 * 1024 * 1024,
        ),
    )(predicted_prob, tgt2d)
    # TODO(synk): v7x dual-TensorCore variant — emit per-block partial sums on a
    #   "parallel" grid axis and finish the mean in the wrapper.
    # TODO(synk): for vocab-scale C, gather only the 128-lane slice holding
    #   target[i] (scalar prefetch + data-dependent index_map) instead of streaming N*C.
    return out[0, 0]


if __name__ == "__main__":
    key = jax.random.PRNGKey(0)
    k1, k2, k3, k4 = jax.random.split(key, 4)

    # Small case consistent with the module: batch=8 samples, 32 classes (single block).
    N, C = 8, 32
    logits = jax.random.normal(k1, (N, C), dtype=jnp.float32)
    predicted_prob = jax.nn.log_softmax(logits, axis=-1)   # log-probabilities
    target = jax.random.randint(k2, (N,), 0, C, dtype=jnp.int32)

    loss = kl_divergence_loss(predicted_prob, target)
    jax.block_until_ready(loss)
    ref = -jnp.mean(predicted_prob[jnp.arange(N), target])
    assert jnp.allclose(loss, ref, atol=1e-6, rtol=1e-6), (loss, ref)

    # Multi-block case exercising the tiled/pipelined path and padded-row masking
    # (N=20 with TILE_N=8 -> 3 grid steps, last block half-padded).
    N2, C2 = 20, 32
    logits2 = jax.random.normal(k3, (N2, C2), dtype=jnp.float32)
    predicted_prob2 = jax.nn.log_softmax(logits2, axis=-1)
    target2 = jax.random.randint(k4, (N2,), 0, C2, dtype=jnp.int32)

    loss2 = kl_divergence_loss(predicted_prob2, target2, tile_n=8)
    jax.block_until_ready(loss2)
    ref2 = -jnp.mean(predicted_prob2[jnp.arange(N2), target2])
    assert jnp.allclose(loss2, ref2, atol=1e-6, rtol=1e-6), (loss2, ref2)

    print("KERNEL_OK")
</pallas_src>

<mosaic_0001>
module attributes {stable_mosaic.version = 11 : i64} {
  func.func @_nll_kernel(%arg0: i32, %arg1: memref<8x32xf32, #tpu.memory_space<vmem>>, %arg2: memref<8x1xi32, #tpu.memory_space<vmem>>, %arg3: memref<1x1xf32, #tpu.memory_space<vmem>>, %arg4: memref<1x1xf32, #tpu.memory_space<vmem>>) attributes {dimension_semantics = [#tpu.dimension_semantics<arbitrary>], iteration_bounds = array<i64: 1>, scalar_prefetch = 0 : i64, scratch_operands = 1 : i64, tpu.core_type = #tpu.core_type<tc>, window_params = [{transform_indices = @transform_0, window_bounds = array<i64: 8, 32>}, {transform_indices = @transform_1, window_bounds = array<i64: 8, 1>}, {pipeline_mode = #tpu.pipeline_mode<synchronous>, transform_indices = @transform_2, window_bounds = array<i64: 1, 1>}]} {
    %c0_i32 = arith.constant 0 : i32
    %0 = arith.cmpi eq, %arg0, %c0_i32 : i32
    %1 = arith.extui %0 : i1 to i32
    %c0_i32_0 = arith.constant 0 : i32
    %2 = arith.cmpi ne, %1, %c0_i32_0 : i32
    scf.if %2 {
      %cst_12 = arith.constant 0.000000e+00 : f32
      %28 = vector.broadcast %cst_12 : f32 to vector<1x1xf32>
      %c0_13 = arith.constant 0 : index
      %c0_14 = arith.constant 0 : index
      %29 = vector.load %arg4[%c0_13, %c0_14] : memref<1x1xf32, #tpu.memory_space<vmem>>, vector<1x1xf32>
      tpu.vector_store %arg4[%c0_13, %c0_14], %28 {strides = array<i32>} : memref<1x1xf32, #tpu.memory_space<vmem>>, vector<1x1xf32>,
    } else {
    }
    %c0 = arith.constant 0 : index
    %c0_1 = arith.constant 0 : index
    %3 = vector.load %arg1[%c0, %c0_1] : memref<8x32xf32, #tpu.memory_space<vmem>>, vector<8x32xf32>
    %c0_2 = arith.constant 0 : index
    %c0_3 = arith.constant 0 : index
    %4 = vector.load %arg2[%c0_2, %c0_3] : memref<8x1xi32, #tpu.memory_space<vmem>>, vector<8x1xi32>
    %5 = tpu.iota {dimensions = array<i32: 1>} : vector<8x32xi32>
    %6 = tpu.iota {dimensions = array<i32: 0>} : vector<8x32xi32>
    %c8_i32 = arith.constant 8 : i32
    %7 = arith.muli %arg0, %c8_i32 : i32
    %8 = vector.broadcast %7 : i32 to vector<8x32xi32>
    %9 = arith.addi %6, %8 : vector<8x32xi32>
    %10 = vector.broadcast %4 : vector<8x1xi32> to vector<8x32xi32>
    %11 = arith.cmpi eq, %5, %10 : vector<8x32xi32>
    %c8_i32_4 = arith.constant 8 : i32
    %12 = vector.broadcast %c8_i32_4 : i32 to vector<8x32xi32>
    %13 = arith.cmpi slt, %9, %12 : vector<8x32xi32>
    %14 = arith.andi %11, %13 : vector<8x32xi1>
    %cst = arith.constant 0.000000e+00 : f32
    %15 = vector.broadcast %cst : f32 to vector<8x32xf32>
    %16 = arith.select %14, %3, %15 : vector<8x32xi1>, vector<8x32xf32>
    %c0_5 = arith.constant 0 : index
    %c0_6 = arith.constant 0 : index
    %17 = vector.load %arg4[%c0_5, %c0_6] : memref<1x1xf32, #tpu.memory_space<vmem>>, vector<1x1xf32>
    %18 = vector.shape_cast %16 : vector<8x32xf32> to vector<1x8x32xf32>
    %cst_7 = arith.constant dense<0.000000e+00> : vector<1xf32>
    %19 = vector.multi_reduction <add>, %18, %cst_7 [1, 2] : vector<1x8x32xf32> to vector<1xf32>
    %20 = vector.shape_cast %19 : vector<1xf32> to vector<1x1x1xf32>
    %21 = vector.extract %20[0, 0, 0] : f32 from vector<1x1x1xf32>
    %22 = vector.broadcast %21 : f32 to vector<1x1xf32>
    %23 = arith.addf %17, %22 : vector<1x1xf32>
    %c0_8 = arith.constant 0 : index
    %c0_9 = arith.constant 0 : index
    %24 = vector.load %arg4[%c0_8, %c0_9] : memref<1x1xf32, #tpu.memory_space<vmem>>, vector<1x1xf32>
    tpu.vector_store %arg4[%c0_8, %c0_9], %23 {strides = array<i32>} : memref<1x1xf32, #tpu.memory_space<vmem>>, vector<1x1xf32>,
    %c0_i32_10 = arith.constant 0 : i32
    %25 = arith.cmpi eq, %arg0, %c0_i32_10 : i32
    %26 = arith.extui %25 : i1 to i32
    %c0_i32_11 = arith.constant 0 : i32
    %27 = arith.cmpi ne, %26, %c0_i32_11 : i32
    scf.if %27 {
      %c0_12 = arith.constant 0 : index
      %c0_13 = arith.constant 0 : index
      %28 = vector.load %arg4[%c0_12, %c0_13] : memref<1x1xf32, #tpu.memory_space<vmem>>, vector<1x1xf32>
      %cst_14 = arith.constant 0.000000e+00 : f32
      %29 = vector.broadcast %cst_14 : f32 to vector<1x1xf32>
      %30 = arith.subf %29, %28 : vector<1x1xf32>
      %cst_15 = arith.constant 8.000000e+00 : f32
      %31 = vector.broadcast %cst_15 : f32 to vector<1x1xf32>
      %32 = arith.divf %30, %31 : vector<1x1xf32>
      %c0_16 = arith.constant 0 : index
      %c0_17 = arith.constant 0 : index
      %33 = vector.load %arg3[%c0_16, %c0_17] : memref<1x1xf32, #tpu.memory_space<vmem>>, vector<1x1xf32>
      tpu.vector_store %arg3[%c0_16, %c0_17], %32 {strides = array<i32>} : memref<1x1xf32, #tpu.memory_space<vmem>>, vector<1x1xf32>,
    } else {
    }
    return
  }
  func.func @transform_0(%arg0: i32) -> (i32, i32) {
    %c0_i32 = arith.constant 0 : i32
    %c0_i32_0 = arith.constant 0 : i32
    return %arg0, %c0_i32 : i32, i32
  }
  func.func @transform_1(%arg0: i32) -> (i32, i32) {
    %c0_i32 = arith.constant 0 : i32
    %c0_i32_0 = arith.constant 0 : i32
    return %arg0, %c0_i32 : i32, i32
  }
  func.func @transform_2(%arg0: i32) -> (i32, i32) {
    %c0_i32 = arith.constant 0 : i32
    %c0_i32_0 = arith.constant 0 : i32
    %c0_i32_1 = arith.constant 0 : i32
    return %c0_i32, %c0_i32_0 : i32, i32
  }
}

</mosaic_0001>

<bundles_post_ra>
// kernel: tpu_custom_call.1
= control target key start
LH: loop header
LB: loop body
LE: loop exit
PB: predicated region body
PF: predicated region fallthrough
CT: control target
= control target key end

     0   :  { %s141_s0 = inlined_call_operand.vmem [shape: f32[8,32], index: 0, kind: input, shape index: {}]   ;;  %s142_s1 = inlined_call_operand.vmem [shape: s32[8,1], index: 1, kind: input, shape index: {}]   ;;  %s143_s2 = inlined_call_operand.hbm [shape: f32[1,1], index: 2, kind: output, shape index: {}]  }
   0x1   :  { %v19_v0 = vld [vmem:[%s142_s1] sm:$0xff] }
   0x2   :  { %7 = vsyncpa [#allocation4], 0  ;;  %v102_v1 = vmov 0   ;;  %v20_v2 = vlaneseq  ;;  %v18_v4 = vld [vmem:[%s141_s0] sm:$0xff]  ;;  %vm35_vm0 = vcmask 261120   ;;  %vm16_vm2 = vcmask 0  }
   0x3   :  { %77 = vset.pattern.permute.xlu0 %v102_v1  ;;  %v103_v8 = vmov 0.0   ;;  %s104_s1 = smov [#allocation3]  }
   0x4   :  { %28 = vperm.xlu0 %77, %v19_v0   ;;  %v21_v3 = vand.u32 127, %v20_v2  ;;  %17 = vst.msk [vmem:[#allocation2] sm:$0x1] %vm16_vm2, %v103_v8  ;;  %s64_s13 = sshll.u32 %s104_s1, 4  ;;  %s65_s13 = int_to_ptr.vmem [resolvable:$true] %s64_s13 }
   0x5   :  { %s78_s14 = scalar_lea.vmem %s65_s13, 16  ;;  %s82_s15 = scalar_lea.vmem %s65_s13, 32 }
   0x6   :  { %p79_p0 = scmp.ne.s32.totalorder %s65_s13, %s78_s14  ;;  %p83_p1 = scmp.lt.s32.totalorder %s65_s13, %s65_s13 }
   0x7   :  { %p84_p2 = scmp.lt.s32.totalorder %s82_s15, %s78_s14 }
   0x9   :  { %p85_p3 = por %p84_p2, %p83_p1 }
   0xb   :  { %v34_v16 = vld [vmem:[#allocation2] sm:$0x1]  ;;  %p86_p4 = pnand %p85_p3, %p79_p0 }
  0x83   :  { %v29_v5 = vpop.permute.xlu0 %28 }
  0x84   :  { %vm30_vm1 = vcmp.eq.s32.totalorder %v21_v3, %v29_v5 }
  0x85   :  { %v33_v6 = vsel %vm30_vm1, %v18_v4, 0.0 }
  0x86   :  { %v36_v7 = vsel %vm35_vm0, %v33_v6, 0.0 }
  0x87   :  { %37 = vadd.xlane.f32.xlu0 %v36_v7 }
 0x114   :  { %v38_v9 = vpop.xlane.xlu0 %37 }
 0x115   :  { %v39_v10 = vrot.slane %v38_v9, 4 }
 0x117   :  { %v40_v11 = vadd.f32 %v39_v10, %v38_v9 }
 0x119   :  { %v41_v12 = vrot.slane %v40_v11, 2 }
 0x11b   :  { %v42_v13 = vadd.f32 %v41_v12, %v40_v11 }
 0x11d   :  { %v43_v14 = vrot.slane %v42_v13, 1 }
 0x11f   :  { %v44_v15 = vadd.f32 %v43_v14, %v42_v13 }
 0x121   :  { %72 = vpush %v44_v15 }
 0x152   :  { %s73_s0 = spop %72 }
 0x153   :  { %v46_v17 = vstv %s73_s0 }
 0x154   :  { %v47_v18 = vadd.f32 %v46_v17, %v34_v16 }
 0x156   :  { %49 = vst.msk [vmem:[#allocation2] sm:$0x1] %vm16_vm2, %v47_v18 }
 0x15d   :  { %v53_v19 = vld [vmem:[#allocation2] sm:$0x1] }
 0x15e   :  { %v54_v20 = vsub.f32 0.0, %v53_v19 }
 0x160   :  { %v56_v21 = vmul.f32 0.125, %v54_v20 }
 0x162   :  { %57 = vst.msk [vmem:[#allocation3] sm:$0x1] %vm16_vm2, %v56_v21 }
 0x163   :  { %89 = shalt.err (!%p86_p4)
}
 0x164   :  { %s90_s18 = scalar_lea.hbm %s143_s2, 16 }
 0x165   :  { %p91_p5 = scmp.ne.s32.totalorder %s143_s2, %s90_s18  ;;  %p94_p6 = scmp.lt.u32.totalorder %s90_s18, %s143_s2 }
 0x167   :  { %p96_p7 = pnand %p94_p6, %p91_p5 }
 0x169   :  { %99 = shalt.err (!%p96_p7)
}
 0x16a   :  { %67 = dma.vmem_to_hbm [thread:$0]  %s65_s13, 16, %s143_s2, [#allocation4]  }
 0x16b   :  { %100 = dma.done.wait [#allocation4], 16  }
 0x16c   :  { %101 = vsyncadd [#allocation4], 4294967280 }
 0x16d   :  { %71 = vsyncpa [#allocation4], 1 }

</bundles_post_ra>
